<compile_context>
chip_gen: v5e
topology: v5e:2x2
jax: 0.10.0
libtpu: 0.0.40
codegen_flags: <defaults>
</compile_context>

<pallas_src>
import functools

import jax
import jax.numpy as jnp
from jax import lax
from jax.experimental import pallas as pl
from jax.experimental.pallas import tpu as pltpu

LANES = 128
TILE_BYTES_TARGET = 2 * 1024 * 1024   # combined bytes of the two input blocks per step
TILE_ROWS_HARD_CAP = 8192


def _round_up(x, m):
    return ((x + m - 1) // m) * m


def _sublane_multiple(dtype):
    # second-minor block granularity: 8 for 4-byte, 16 for 2-byte, 32 for 1-byte dtypes
    return max(8, 32 // jnp.dtype(dtype).itemsize)


def _num_core_splits():
    # v7x has 2 TensorCores per chip; v5e/v6e have 1 (a size-2 split there is
    # just a serial outer loop plus a possible phantom tile).
    try:
        kind = jax.devices()[0].device_kind.lower()
    except Exception:
        return 1
    return 2 if ("v7" in kind or "7x" in kind) else 1


def _pow(x, gamma):
    # integer gamma -> repeated multiplies (VPU), avoiding jnp.power's exp+log (EUP).
    g = float(gamma)
    if g == int(g) and 0 <= int(g) <= 8:
        gi = int(g)
        if gi == 0:
            return jnp.ones_like(x)
        r = x
        for _ in range(gi - 1):
            r = r * x
        return r
    return jnp.power(x, jnp.float32(g))


def _focal_kernel(s_ref, t_ref, out_ref, *, rows, tile_rows, tiles_per_split, gamma):
    c = pl.program_id(0)   # per-core split (CORE_PARALLEL on v7x)
    i = pl.program_id(1)   # tiles within the split (accumulation axis)

    # Zero this split's resident accumulator block on its first visit.
    @pl.when(i == 0)
    def _init():
        out_ref[...] = jnp.zeros_like(out_ref)

    logical_tile = c * tiles_per_split + i
    full_tiles = rows // tile_rows   # tiles whose rows are all in-bounds

    def fold(x):
        # (tile_rows, 128) -> (8, 128) with pure vreg-wise VPU adds; the
        # cross-lane/sublane collapse is deferred to the wrapper epilogue.
        return x.reshape(tile_rows // 8, 8, LANES).sum(axis=0)

    def accumulate(s, t):
        is_pos = t == 1.0
        is_neg = t < 1.0
        # Single log per element: route the argument (pos/neg are disjoint, so
        # this reproduces log(s)*(1-s)^g for positives and log(1-s)*s^g for
        # negatives exactly).
        log_arg = jnp.where(is_pos, s, 1.0 - s)
        base = jnp.where(is_pos, 1.0 - s, s)
        l = jnp.log(log_arg) * _pow(base, gamma)
        out_ref[0] += fold(jnp.where(is_pos, l, 0.0))
        out_ref[1] += fold(jnp.where(is_neg, l, 0.0))
        out_ref[2] += fold(jnp.where(is_pos, 1.0, 0.0))

    @pl.when(logical_tile < full_tiles)
    def _fast():
        # Fully-valid interior tile: no iota / masking work at all.
        accumulate(s_ref[...].astype(jnp.float32), t_ref[...].astype(jnp.float32))

    @pl.when(logical_tile >= full_tiles)
    def _masked():
        # Last (partial) tile and clamped phantom tiles of an uneven split.
        row_ids = lax.broadcasted_iota(jnp.int32, (tile_rows, LANES), 0)
        valid = (logical_tile * tile_rows + row_ids) < rows
        # Sanitize out-of-bounds garbage: s=0.5 keeps logs finite, t=2.0 is
        # neither ==1 nor <1, so masked rows contribute exactly 0.
        s = jnp.where(valid, s_ref[...].astype(jnp.float32), jnp.float32(0.5))
        t = jnp.where(valid, t_ref[...].astype(jnp.float32), jnp.float32(2.0))
        accumulate(s, t)


def _partial_sums_small(s, t, gamma):
    # Plain-jnp path for the ragged tail (< 128 elements): negligible cost.
    s = s.astype(jnp.float32)
    t = t.astype(jnp.float32)
    is_pos = t == 1.0
    is_neg = t < 1.0
    log_arg = jnp.where(is_pos, s, 1.0 - s)
    base = jnp.where(is_pos, 1.0 - s, s)
    l = jnp.log(log_arg) * _pow(base, gamma)
    return jnp.stack([
        jnp.where(is_pos, l, 0.0).sum(),
        jnp.where(is_neg, l, 0.0).sum(),
        is_pos.astype(jnp.float32).sum(),
    ])


def vanilla_focal_loss(source, target, alpha=0.25, gamma=2):
    """Exact reproduction of VanillaFocalLoss.forward semantics."""
    assert source.shape == target.shape
    s_flat = jnp.ravel(source)   # row-major flatten: free for contiguous arrays
    t_flat = jnp.ravel(target)
    n = s_flat.shape[0]

    n_tail = n % LANES
    n_head = n - n_tail

    sums = jnp.zeros((3,), jnp.float32)   # [pos_loss_sum, neg_loss_sum, pos_count]

    if n_tail:
        # TODO(synk): XLA may still materialize the head prefix slice below;
        # only the (<128-element) tail is computed outside the kernel, and the
        # common lane-aligned case takes no copy at all.
        sums = sums + _partial_sums_small(s_flat[n_head:], t_flat[n_head:], gamma)

    if n_head:
        s_head = s_flat[:n_head] if n_tail else s_flat
        t_head = t_flat[:n_head] if n_tail else t_flat
        rows = n_head // LANES
        s2d = s_head.reshape(rows, LANES)
        t2d = t_head.reshape(rows, LANES)

        gran = max(_sublane_multiple(s2d.dtype), _sublane_multiple(t2d.dtype))
        bytes_per_row = LANES * (s2d.dtype.itemsize + t2d.dtype.itemsize)
        cap = max(gran, (TILE_BYTES_TARGET // bytes_per_row) // gran * gran)
        cap = min(cap, TILE_ROWS_HARD_CAP)
        tile_rows = min(cap, _round_up(rows, gran))
        num_tiles = pl.cdiv(rows, tile_rows)

        nsplit = min(_num_core_splits(), num_tiles)
        tiles_per_split = pl.cdiv(num_tiles, nsplit)

        if nsplit > 1:
            core_par = getattr(pltpu, "CORE_PARALLEL", None)
            arb = getattr(pltpu, "ARBITRARY", "arbitrary")
            dim_sem = (core_par, arb) if core_par is not None else ("parallel", "arbitrary")
        else:
            dim_sem = ("arbitrary", "arbitrary")

        def in_map(c, i):
            # Clamp so a phantom tile of an uneven split re-reads the last real
            # tile; it is fully masked in-kernel and contributes exactly 0.
            return (jnp.minimum(c * tiles_per_split + i, num_tiles - 1), 0)

        partials = pl.pallas_call(
            functools.partial(
                _focal_kernel,
                rows=rows,
                tile_rows=tile_rows,
                tiles_per_split=tiles_per_split,
                gamma=gamma,
            ),
            out_shape=jax.ShapeDtypeStruct((nsplit, 3, 8, LANES), jnp.float32),
            grid_spec=pltpu.PrefetchScalarGridSpec(
                num_scalar_prefetch=0,
                grid=(nsplit, tiles_per_split),
                in_specs=[
                    pl.BlockSpec((tile_rows, LANES), in_map),
                    pl.BlockSpec((tile_rows, LANES), in_map),
                ],
                out_specs=pl.BlockSpec((None, 3, 8, LANES), lambda c, i: (c, 0, 0, 0)),
            ),
            compiler_params=pltpu.CompilerParams(
                dimension_semantics=dim_sem,
                vmem_limit_bytes=32 * 1024 * 1024,
            ),
        )(s2d, t2d)

        sums = sums + partials.sum(axis=(0, 2, 3))

    pos_loss_sum = sums[0] * jnp.float32(alpha)
    neg_loss_sum = sums[1] * jnp.float32(1.0 - alpha)
    pos_nums = sums[2]

    # data-dependent branch from the PyTorch module -> jnp.where (glue)
    loss = jnp.where(
        pos_nums == 0,
        -neg_loss_sum,
        -(pos_loss_sum + neg_loss_sum) / jnp.clip(pos_nums, 1.0),
    )
    return loss   # .mean() of a scalar is the scalar itself


def _reference(source, target, alpha=0.25, gamma=2):
    source = source.astype(jnp.float32)
    target = target.astype(jnp.float32)
    pos_inds = (target == 1.0).astype(jnp.float32)
    neg_inds = (target < 1.0).astype(jnp.float32)
    pos_loss = jnp.log(source) * (1.0 - source) ** gamma * pos_inds
    neg_loss = jnp.log(1.0 - source) * source ** gamma * neg_inds
    pos_nums = pos_inds.sum()
    pos_loss = pos_loss.sum() * alpha
    neg_loss = neg_loss.sum() * (1.0 - alpha)
    return jnp.where(
        pos_nums == 0,
        -neg_loss,
        -(pos_loss + neg_loss) / jnp.clip(pos_nums, 1.0),
    )


if __name__ == "__main__":
    key = jax.random.PRNGKey(0)
    k1, k2 = jax.random.split(key)

    B, C, H, W = 2, 4, 16, 16
    # source: probabilities in (0, 1)
    source = jax.nn.sigmoid(jax.random.normal(k1, (B, C, H, W), jnp.float32))
    # target: mostly values < 1, a few exact 1s (positive centers)
    target = jax.random.uniform(k2, (B, C, H, W), jnp.float32, 0.0, 0.9)
    target = target.at[0, 1, 3, 5].set(1.0)
    target = target.at[1, 2, 7, 9].set(1.0)
    target = target.at[1, 0, 12, 2].set(1.0)

    loss = vanilla_focal_loss(source, target, alpha=0.25, gamma=2)
    loss = jax.block_until_ready(loss)

    ref = _reference(source, target, alpha=0.25, gamma=2)
    assert jnp.allclose(loss, ref, rtol=1e-5, atol=1e-5), (loss, ref)

    print("KERNEL_OK")
</pallas_src>

<mosaic_0001>
module attributes {stable_mosaic.version = 11 : i64} {
  func.func @_focal_kernel(%arg0: i32, %arg1: i32, %arg2: memref<16x128xf32, #tpu.memory_space<vmem>>, %arg3: memref<16x128xf32, #tpu.memory_space<vmem>>, %arg4: memref<1x3x8x128xf32, #tpu.memory_space<vmem>>) attributes {dimension_semantics = [#tpu.dimension_semantics<arbitrary>, #tpu.dimension_semantics<arbitrary>], iteration_bounds = array<i64: 1, 1>, scalar_prefetch = 0 : i64, scratch_operands = 0 : i64, tpu.core_type = #tpu.core_type<tc>, window_params = [{transform_indices = @transform_0, window_bounds = array<i64: 16, 128>}, {transform_indices = @transform_1, window_bounds = array<i64: 16, 128>}, {transform_indices = @transform_2, window_bounds = array<i64: 1, 3, 8, 128>}]} {
    %c0_i32 = arith.constant 0 : i32
    %0 = arith.cmpi eq, %arg1, %c0_i32 : i32
    %1 = arith.extui %0 : i1 to i32
    %c0_i32_0 = arith.constant 0 : i32
    %2 = arith.cmpi ne, %1, %c0_i32_0 : i32
    scf.if %2 {
      %cst = arith.constant 0.000000e+00 : f32
      %11 = vector.broadcast %cst : f32 to vector<3x8x128xf32>
      %c0 = arith.constant 0 : index
      %c0_5 = arith.constant 0 : index
      %c0_6 = arith.constant 0 : index
      %c0_7 = arith.constant 0 : index
      %12 = vector.load %arg4[%c0, %c0_5, %c0_6, %c0_7] : memref<1x3x8x128xf32, #tpu.memory_space<vmem>>, vector<1x3x8x128xf32>
      %13 = vector.shape_cast %12 : vector<1x3x8x128xf32> to vector<3x8x128xf32>
      %14 = vector.shape_cast %11 : vector<3x8x128xf32> to vector<1x3x8x128xf32>
      tpu.vector_store %arg4[%c0, %c0_5, %c0_6, %c0_7], %14 {strides = array<i32>} : memref<1x3x8x128xf32, #tpu.memory_space<vmem>>, vector<1x3x8x128xf32>,
    } else {
    }
    %c1_i32 = arith.constant 1 : i32
    %3 = arith.muli %arg0, %c1_i32 : i32
    %4 = arith.addi %3, %arg1 : i32
    %c1_i32_1 = arith.constant 1 : i32
    %5 = arith.cmpi slt, %4, %c1_i32_1 : i32
    %6 = arith.extui %5 : i1 to i32
    %c0_i32_2 = arith.constant 0 : i32
    %7 = arith.cmpi ne, %6, %c0_i32_2 : i32
    scf.if %7 {
      %c0 = arith.constant 0 : index
      %c0_5 = arith.constant 0 : index
      %11 = vector.load %arg2[%c0, %c0_5] : memref<16x128xf32, #tpu.memory_space<vmem>>, vector<16x128xf32>
      %c0_6 = arith.constant 0 : index
      %c0_7 = arith.constant 0 : index
      %12 = vector.load %arg3[%c0_6, %c0_7] : memref<16x128xf32, #tpu.memory_space<vmem>>, vector<16x128xf32>
      %cst = arith.constant 1.000000e+00 : f32
      %13 = vector.broadcast %cst : f32 to vector<16x128xf32>
      %14 = arith.cmpf oeq, %12, %13 : vector<16x128xf32>
      %cst_8 = arith.constant 1.000000e+00 : f32
      %15 = vector.broadcast %cst_8 : f32 to vector<16x128xf32>
      %16 = arith.cmpf olt, %12, %15 : vector<16x128xf32>
      %cst_9 = arith.constant 1.000000e+00 : f32
      %17 = vector.broadcast %cst_9 : f32 to vector<16x128xf32>
      %18 = arith.subf %17, %11 : vector<16x128xf32>
      %19 = arith.select %14, %11, %18 : vector<16x128xi1>, vector<16x128xf32>
      %cst_10 = arith.constant 1.000000e+00 : f32
      %20 = vector.broadcast %cst_10 : f32 to vector<16x128xf32>
      %21 = arith.subf %20, %11 : vector<16x128xf32>
      %22 = arith.select %14, %21, %11 : vector<16x128xi1>, vector<16x128xf32>
      %23 = math.log %19 : vector<16x128xf32>
      %24 = arith.mulf %22, %22 : vector<16x128xf32>
      %25 = arith.mulf %23, %24 : vector<16x128xf32>
      %c0_11 = arith.constant 0 : index
      %c0_12 = arith.constant 0 : index
      %c0_13 = arith.constant 0 : index
      %c0_14 = arith.constant 0 : index
      %26 = vector.load %arg4[%c0_11, %c0_12, %c0_13, %c0_14] : memref<1x3x8x128xf32, #tpu.memory_space<vmem>>, vector<1x1x8x128xf32>
      %27 = vector.shape_cast %26 : vector<1x1x8x128xf32> to vector<8x128xf32>
      %cst_15 = arith.constant 0.000000e+00 : f32
      %28 = vector.broadcast %cst_15 : f32 to vector<16x128xf32>
      %29 = arith.select %14, %25, %28 : vector<16x128xi1>, vector<16x128xf32>
      %30 = vector.shape_cast %29 : vector<16x128xf32> to vector<2x8x128xf32>
      %cst_16 = arith.constant dense<0.000000e+00> : vector<8x128xf32>
      %31 = vector.multi_reduction <add>, %30, %cst_16 [0] : vector<2x8x128xf32> to vector<8x128xf32>
      %32 = arith.addf %27, %31 : vector<8x128xf32>
      %c0_17 = arith.constant 0 : index
      %c0_18 = arith.constant 0 : index
      %c0_19 = arith.constant 0 : index
      %c0_20 = arith.constant 0 : index
      %33 = vector.load %arg4[%c0_17, %c0_18, %c0_19, %c0_20] : memref<1x3x8x128xf32, #tpu.memory_space<vmem>>, vector<1x1x8x128xf32>
      %34 = vector.shape_cast %33 : vector<1x1x8x128xf32> to vector<8x128xf32>
      %35 = vector.shape_cast %32 : vector<8x128xf32> to vector<1x1x8x128xf32>
      tpu.vector_store %arg4[%c0_17, %c0_18, %c0_19, %c0_20], %35 {strides = array<i32>} : memref<1x3x8x128xf32, #tpu.memory_space<vmem>>, vector<1x1x8x128xf32>,
      %c0_21 = arith.constant 0 : index
      %c1 = arith.constant 1 : index
      %c0_22 = arith.constant 0 : index
      %c0_23 = arith.constant 0 : index
      %36 = vector.load %arg4[%c0_21, %c1, %c0_22, %c0_23] : memref<1x3x8x128xf32, #tpu.memory_space<vmem>>, vector<1x1x8x128xf32>
      %37 = vector.shape_cast %36 : vector<1x1x8x128xf32> to vector<8x128xf32>
      %cst_24 = arith.constant 0.000000e+00 : f32
      %38 = vector.broadcast %cst_24 : f32 to vector<16x128xf32>
      %39 = arith.select %16, %25, %38 : vector<16x128xi1>, vector<16x128xf32>
      %40 = vector.shape_cast %39 : vector<16x128xf32> to vector<2x8x128xf32>
      %cst_25 = arith.constant dense<0.000000e+00> : vector<8x128xf32>
      %41 = vector.multi_reduction <add>, %40, %cst_25 [0] : vector<2x8x128xf32> to vector<8x128xf32>
      %42 = arith.addf %37, %41 : vector<8x128xf32>
      %c0_26 = arith.constant 0 : index
      %c1_27 = arith.constant 1 : index
      %c0_28 = arith.constant 0 : index
      %c0_29 = arith.constant 0 : index
      %43 = vector.load %arg4[%c0_26, %c1_27, %c0_28, %c0_29] : memref<1x3x8x128xf32, #tpu.memory_space<vmem>>, vector<1x1x8x128xf32>
      %44 = vector.shape_cast %43 : vector<1x1x8x128xf32> to vector<8x128xf32>
      %45 = vector.shape_cast %42 : vector<8x128xf32> to vector<1x1x8x128xf32>
      tpu.vector_store %arg4[%c0_26, %c1_27, %c0_28, %c0_29], %45 {strides = array<i32>} : memref<1x3x8x128xf32, #tpu.memory_space<vmem>>, vector<1x1x8x128xf32>,
      %c0_30 = arith.constant 0 : index
      %c2 = arith.constant 2 : index
      %c0_31 = arith.constant 0 : index
      %c0_32 = arith.constant 0 : index
      %46 = vector.load %arg4[%c0_30, %c2, %c0_31, %c0_32] : memref<1x3x8x128xf32, #tpu.memory_space<vmem>>, vector<1x1x8x128xf32>
      %47 = vector.shape_cast %46 : vector<1x1x8x128xf32> to vector<8x128xf32>
      %cst_33 = arith.constant 1.000000e+00 : f32
      %cst_34 = arith.constant 0.000000e+00 : f32
      %48 = vector.broadcast %cst_33 : f32 to vector<16x128xf32>
      %49 = vector.broadcast %cst_34 : f32 to vector<16x128xf32>
      %50 = arith.select %14, %48, %49 : vector<16x128xi1>, vector<16x128xf32>
      %51 = vector.shape_cast %50 : vector<16x128xf32> to vector<2x8x128xf32>
      %cst_35 = arith.constant dense<0.000000e+00> : vector<8x128xf32>
      %52 = vector.multi_reduction <add>, %51, %cst_35 [0] : vector<2x8x128xf32> to vector<8x128xf32>
      %53 = arith.addf %47, %52 : vector<8x128xf32>
      %c0_36 = arith.constant 0 : index
      %c2_37 = arith.constant 2 : index
      %c0_38 = arith.constant 0 : index
      %c0_39 = arith.constant 0 : index
      %54 = vector.load %arg4[%c0_36, %c2_37, %c0_38, %c0_39] : memref<1x3x8x128xf32, #tpu.memory_space<vmem>>, vector<1x1x8x128xf32>
      %55 = vector.shape_cast %54 : vector<1x1x8x128xf32> to vector<8x128xf32>
      %56 = vector.shape_cast %53 : vector<8x128xf32> to vector<1x1x8x128xf32>
      tpu.vector_store %arg4[%c0_36, %c2_37, %c0_38, %c0_39], %56 {strides = array<i32>} : memref<1x3x8x128xf32, #tpu.memory_space<vmem>>, vector<1x1x8x128xf32>,
    } else {
    }
    %c1_i32_3 = arith.constant 1 : i32
    %8 = arith.cmpi sge, %4, %c1_i32_3 : i32
    %9 = arith.extui %8 : i1 to i32
    %c0_i32_4 = arith.constant 0 : i32
    %10 = arith.cmpi ne, %9, %c0_i32_4 : i32
    scf.if %10 {
      %11 = tpu.iota {dimensions = array<i32: 0>} : vector<16x128xi32>
      %c16_i32 = arith.constant 16 : i32
      %12 = arith.muli %4, %c16_i32 : i32
      %13 = vector.broadcast %12 : i32 to vector<16x128xi32>
      %14 = arith.addi %13, %11 : vector<16x128xi32>
      %c16_i32_5 = arith.constant 16 : i32
      %15 = vector.broadcast %c16_i32_5 : i32 to vector<16x128xi32>
      %16 = arith.cmpi slt, %14, %15 : vector<16x128xi32>
      %c0 = arith.constant 0 : index
      %c0_6 = arith.constant 0 : index
      %17 = vector.load %arg2[%c0, %c0_6] : memref<16x128xf32, #tpu.memory_space<vmem>>, vector<16x128xf32>
      %cst = arith.constant 5.000000e-01 : f32
      %18 = vector.broadcast %cst : f32 to vector<16x128xf32>
      %19 = arith.select %16, %17, %18 : vector<16x128xi1>, vector<16x128xf32>
      %c0_7 = arith.constant 0 : index
      %c0_8 = arith.constant 0 : index
      %20 = vector.load %arg3[%c0_7, %c0_8] : memref<16x128xf32, #tpu.memory_space<vmem>>, vector<16x128xf32>
      %cst_9 = arith.constant 2.000000e+00 : f32
      %21 = vector.broadcast %cst_9 : f32 to vector<16x128xf32>
      %22 = arith.select %16, %20, %21 : vector<16x128xi1>, vector<16x128xf32>
      %cst_10 = arith.constant 1.000000e+00 : f32
      %23 = vector.broadcast %cst_10 : f32 to vector<16x128xf32>
      %24 = arith.cmpf oeq, %22, %23 : vector<16x128xf32>
      %cst_11 = arith.constant 1.000000e+00 : f32
      %25 = vector.broadcast %cst_11 : f32 to vector<16x128xf32>
      %26 = arith.cmpf olt, %22, %25 : vector<16x128xf32>
      %cst_12 = arith.constant 1.000000e+00 : f32
      %27 = vector.broadcast %cst_12 : f32 to vector<16x128xf32>
      %28 = arith.subf %27, %19 : vector<16x128xf32>
      %29 = arith.select %24, %19, %28 : vector<16x128xi1>, vector<16x128xf32>
      %cst_13 = arith.constant 1.000000e+00 : f32
      %30 = vector.broadcast %cst_13 : f32 to vector<16x128xf32>
      %31 = arith.subf %30, %19 : vector<16x128xf32>
      %32 = arith.select %24, %31, %19 : vector<16x128xi1>, vector<16x128xf32>
      %33 = math.log %29 : vector<16x128xf32>
      %34 = arith.mulf %32, %32 : vector<16x128xf32>
      %35 = arith.mulf %33, %34 : vector<16x128xf32>
      %c0_14 = arith.constant 0 : index
      %c0_15 = arith.constant 0 : index
      %c0_16 = arith.constant 0 : index
      %c0_17 = arith.constant 0 : index
      %36 = vector.load %arg4[%c0_14, %c0_15, %c0_16, %c0_17] : memref<1x3x8x128xf32, #tpu.memory_space<vmem>>, vector<1x1x8x128xf32>
      %37 = vector.shape_cast %36 : vector<1x1x8x128xf32> to vector<8x128xf32>
      %cst_18 = arith.constant 0.000000e+00 : f32
      %38 = vector.broadcast %cst_18 : f32 to vector<16x128xf32>
      %39 = arith.select %24, %35, %38 : vector<16x128xi1>, vector<16x128xf32>
      %40 = vector.shape_cast %39 : vector<16x128xf32> to vector<2x8x128xf32>
      %cst_19 = arith.constant dense<0.000000e+00> : vector<8x128xf32>
      %41 = vector.multi_reduction <add>, %40, %cst_19 [0] : vector<2x8x128xf32> to vector<8x128xf32>
      %42 = arith.addf %37, %41 : vector<8x128xf32>
      %c0_20 = arith.constant 0 : index
      %c0_21 = arith.constant 0 : index
      %c0_22 = arith.constant 0 : index
      %c0_23 = arith.constant 0 : index
      %43 = vector.load %arg4[%c0_20, %c0_21, %c0_22, %c0_23] : memref<1x3x8x128xf32, #tpu.memory_space<vmem>>, vector<1x1x8x128xf32>
      %44 = vector.shape_cast %43 : vector<1x1x8x128xf32> to vector<8x128xf32>
      %45 = vector.shape_cast %42 : vector<8x128xf32> to vector<1x1x8x128xf32>
      tpu.vector_store %arg4[%c0_20, %c0_21, %c0_22, %c0_23], %45 {strides = array<i32>} : memref<1x3x8x128xf32, #tpu.memory_space<vmem>>, vector<1x1x8x128xf32>,
      %c0_24 = arith.constant 0 : index
      %c1 = arith.constant 1 : index
      %c0_25 = arith.constant 0 : index
      %c0_26 = arith.constant 0 : index
      %46 = vector.load %arg4[%c0_24, %c1, %c0_25, %c0_26] : memref<1x3x8x128xf32, #tpu.memory_space<vmem>>, vector<1x1x8x128xf32>
      %47 = vector.shape_cast %46 : vector<1x1x8x128xf32> to vector<8x128xf32>
      %cst_27 = arith.constant 0.000000e+00 : f32
      %48 = vector.broadcast %cst_27 : f32 to vector<16x128xf32>
      %49 = arith.select %26, %35, %48 : vector<16x128xi1>, vector<16x128xf32>
      %50 = vector.shape_cast %49 : vector<16x128xf32> to vector<2x8x128xf32>
      %cst_28 = arith.constant dense<0.000000e+00> : vector<8x128xf32>
      %51 = vector.multi_reduction <add>, %50, %cst_28 [0] : vector<2x8x128xf32> to vector<8x128xf32>
      %52 = arith.addf %47, %51 : vector<8x128xf32>
      %c0_29 = arith.constant 0 : index
      %c1_30 = arith.constant 1 : index
      %c0_31 = arith.constant 0 : index
      %c0_32 = arith.constant 0 : index
      %53 = vector.load %arg4[%c0_29, %c1_30, %c0_31, %c0_32] : memref<1x3x8x128xf32, #tpu.memory_space<vmem>>, vector<1x1x8x128xf32>
      %54 = vector.shape_cast %53 : vector<1x1x8x128xf32> to vector<8x128xf32>
      %55 = vector.shape_cast %52 : vector<8x128xf32> to vector<1x1x8x128xf32>
      tpu.vector_store %arg4[%c0_29, %c1_30, %c0_31, %c0_32], %55 {strides = array<i32>} : memref<1x3x8x128xf32, #tpu.memory_space<vmem>>, vector<1x1x8x128xf32>,
      %c0_33 = arith.constant 0 : index
      %c2 = arith.constant 2 : index
      %c0_34 = arith.constant 0 : index
      %c0_35 = arith.constant 0 : index
      %56 = vector.load %arg4[%c0_33, %c2, %c0_34, %c0_35] : memref<1x3x8x128xf32, #tpu.memory_space<vmem>>, vector<1x1x8x128xf32>
      %57 = vector.shape_cast %56 : vector<1x1x8x128xf32> to vector<8x128xf32>
      %cst_36 = arith.constant 1.000000e+00 : f32
      %cst_37 = arith.constant 0.000000e+00 : f32
      %58 = vector.broadcast %cst_36 : f32 to vector<16x128xf32>
      %59 = vector.broadcast %cst_37 : f32 to vector<16x128xf32>
      %60 = arith.select %24, %58, %59 : vector<16x128xi1>, vector<16x128xf32>
      %61 = vector.shape_cast %60 : vector<16x128xf32> to vector<2x8x128xf32>
      %cst_38 = arith.constant dense<0.000000e+00> : vector<8x128xf32>
      %62 = vector.multi_reduction <add>, %61, %cst_38 [0] : vector<2x8x128xf32> to vector<8x128xf32>
      %63 = arith.addf %57, %62 : vector<8x128xf32>
      %c0_39 = arith.constant 0 : index
      %c2_40 = arith.constant 2 : index
      %c0_41 = arith.constant 0 : index
      %c0_42 = arith.constant 0 : index
      %64 = vector.load %arg4[%c0_39, %c2_40, %c0_41, %c0_42] : memref<1x3x8x128xf32, #tpu.memory_space<vmem>>, vector<1x1x8x128xf32>
      %65 = vector.shape_cast %64 : vector<1x1x8x128xf32> to vector<8x128xf32>
      %66 = vector.shape_cast %63 : vector<8x128xf32> to vector<1x1x8x128xf32>
      tpu.vector_store %arg4[%c0_39, %c2_40, %c0_41, %c0_42], %66 {strides = array<i32>} : memref<1x3x8x128xf32, #tpu.memory_space<vmem>>, vector<1x1x8x128xf32>,
    } else {
    }
    return
  }
  func.func @transform_0(%arg0: i32, %arg1: i32) -> (i32, i32) {
    %c1_i32 = arith.constant 1 : i32
    %0 = arith.muli %arg0, %c1_i32 : i32
    %1 = arith.addi %0, %arg1 : i32
    %c0_i32 = arith.constant 0 : i32
    %2 = arith.minsi %1, %c0_i32 : i32
    %c0_i32_0 = arith.constant 0 : i32
    %c0_i32_1 = arith.constant 0 : i32
    return %2, %c0_i32_0 : i32, i32
  }
  func.func @transform_1(%arg0: i32, %arg1: i32) -> (i32, i32) {
    %c1_i32 = arith.constant 1 : i32
    %0 = arith.muli %arg0, %c1_i32 : i32
    %1 = arith.addi %0, %arg1 : i32
    %c0_i32 = arith.constant 0 : i32
    %2 = arith.minsi %1, %c0_i32 : i32
    %c0_i32_0 = arith.constant 0 : i32
    %c0_i32_1 = arith.constant 0 : i32
    return %2, %c0_i32_0 : i32, i32
  }
  func.func @transform_2(%arg0: i32, %arg1: i32) -> (i32, i32, i32, i32) {
    %c0_i32 = arith.constant 0 : i32
    %c0_i32_0 = arith.constant 0 : i32
    %c0_i32_1 = arith.constant 0 : i32
    %c0_i32_2 = arith.constant 0 : i32
    return %arg0, %c0_i32, %c0_i32_0, %c0_i32_1 : i32, i32, i32, i32
  }
}

</mosaic_0001>

<bundles_post_ra>
// kernel: tpu_custom_call.1
= control target key start
LH: loop header
LB: loop body
LE: loop exit
PB: predicated region body
PF: predicated region fallthrough
CT: control target
= control target key end

     0   :  { %7 = vsyncpa [#allocation3], 0  ;;  %s336_s0 = inlined_call_operand.hbm [shape: f32[16,128], index: 0, kind: input, shape index: {}]   ;;  %s337_s1 = inlined_call_operand.hbm [shape: f32[16,128], index: 1, kind: input, shape index: {}]   ;;  %s338_s2 = inlined_call_operand.hbm [shape: f32[1,3,8,128], index: 2, kind: output, shape index: {}]  }
   0x1   :  { %8 = vsyncpa [#allocation6], 0 }
   0x2   :  { %9 = vsyncpa [#allocation4], 0  ;;  %s20_s11 = sshll.u32 %s336_s0, 4  ;;  %s289_s12 = smov [#allocation2]   ;;  %s21_s11 = int_to_ptr.hbm [resolvable:$true] %s20_s11 }
   0x3   :  { %s22_s13 = sshll.u32 %s289_s12, 4  ;;  %s39_s16 = sshll.u32 %s337_s1, 4  ;;  %s23_s13 = int_to_ptr.vmem [resolvable:$true] %s22_s13  ;;  %s40_s16 = int_to_ptr.hbm [resolvable:$true] %s39_s16 }
   0x4   :  { %s290_s17 = smov 128   ;;  %s291_s18 = smov 8  }
   0x5   :  { %28 = dma.hbm_to_vmem [thread:$0]  %s21_s11, 256, %s23_s13, [#allocation3], %s290_s17, %s290_s17, %s291_s18  }
   0x6   :  { %s292_s19 = smov [#allocation5]  }
   0x7   :  { %s41_s20 = sshll.u32 %s292_s19, 4  ;;  %s42_s20 = int_to_ptr.vmem [resolvable:$true] %s41_s20 }
   0x8   :  { %47 = dma.hbm_to_vmem [thread:$0]  %s40_s16, 256, %s42_s20, [#allocation6], %s290_s17, %s290_s17, %s291_s18  }
   0x9   :  { %283 = dma.done.wait [#allocation3], 256  }
   0xa   :  { %284 = vsyncadd [#allocation3], 4294967040 }
   0xb   :  { %285 = dma.done.wait [#allocation6], 256  }
   0xc   :  { %286 = vsyncadd [#allocation6], 4294967040  ;;  %v76_v0 = vld [vmem:[#allocation2] sm:$0xff]  ;;  %v77_v1 = vld [vmem:[#allocation2 + $0x8] sm:$0xff]  ;;  %v293_v6 = vmov 0.0   ;;  %s294_s0 = smov [#allocation7]  }
   0xd   :  { %v78_v2 = vld [vmem:[#allocation5] sm:$0xff]  ;;  %v79_v3 = vld [vmem:[#allocation5 + $0x8] sm:$0xff]  ;;  %v84_v4 = vsub.f32 1.0, %v76_v0  ;;  %v85_v5 = vsub.f32 1.0, %v77_v1  ;;  %s181_s1 = sshll.u32 %s294_s0, 4  ;;  %s183_s23 = sshll.u32 %s338_s2, 4  ;;  %s182_s1 = int_to_ptr.vmem [resolvable:$true] %s181_s1  ;;  %s184_s23 = int_to_ptr.hbm [resolvable:$true] %s183_s23 }
   0xe   :  { %vm80_vm0 = vcmp.eq.f32.partialorder %v78_v2, 1.0  ;;  %vm81_vm1 = vcmp.eq.f32.partialorder %v79_v3, 1.0  ;;  %vm82_vm2 = vcmp.lt.f32.partialorder %v78_v2, 1.0  ;;  %vm83_vm3 = vcmp.lt.f32.partialorder %v79_v3, 1.0 }
   0xf   :  { %v113_v7 = vsel %vm80_vm0, 1.0, %v293_v6  ;;  %v86_v8 = vsel %vm80_vm0, %v76_v0, %v84_v4  ;;  %v87_v9 = vsel %vm81_vm1, %v77_v1, %v85_v5  ;;  %v114_v10 = vsel %vm81_vm1, 1.0, %v293_v6 }
  0x10   :  { %207 = vlog2.f32 %v86_v8  ;;  %v115_v11 = vadd.f32 %v114_v10, %v113_v7  ;;  %v88_v12 = vsel %vm80_vm0, %v84_v4, %v76_v0  ;;  %v89_v13 = vsel %vm81_vm1, %v85_v5, %v77_v1 }
  0x11   :  { %209 = vlog2.f32 %v87_v9  ;;  %v94_v14 = vmul.f32 %v88_v12, %v88_v12  ;;  %v95_v16 = vmul.f32 %v89_v13, %v89_v13 }
  0x12   :  { %117 = vst [vmem:[#allocation7 + $0x10] sm:$0xff] %v115_v11 }
  0x16   :  { %v208_v15 = vpop.eup %207 }
  0x17   :  { %v210_v17 = vpop.eup %209  ;;  %v91_v18 = vmul.f32 0.6931472, %v208_v15 }
  0x18   :  { %v93_v19 = vmul.f32 0.6931472, %v210_v17 }
  0x19   :  { %v96_v20 = vmul.f32 %v94_v14, %v91_v18 }
  0x1a   :  { %v97_v21 = vmul.f32 %v95_v16, %v93_v19 }
  0x1b   :  { %v99_v22 = vsel %vm80_vm0, %v96_v20, 0.0  ;;  %v106_v23 = vsel %vm82_vm2, %v96_v20, 0.0 }
  0x1c   :  { %v100_v24 = vsel %vm81_vm1, %v97_v21, 0.0  ;;  %v107_v25 = vsel %vm83_vm3, %v97_v21, 0.0 }
  0x1d   :  { %v101_v26 = vadd.f32 %v100_v24, %v99_v22  ;;  %v108_v27 = vadd.f32 %v107_v25, %v106_v23 }
  0x1f   :  { %103 = vst [vmem:[#allocation7] sm:$0xff] %v101_v26 }
  0x20   :  { %110 = vst [vmem:[#allocation7 + $0x8] sm:$0xff] %v108_v27 }
  0x21   :  { %189 = dma.vmem_to_hbm [thread:$0]  %s182_s1, 384, %s184_s23, [#allocation4], %s290_s17, %s290_s17, %s291_s18  }
  0x22   :  { %287 = dma.done.wait [#allocation4], 384  }
  0x23   :  { %288 = vsyncadd [#allocation4], 4294966912 }
  0x24   :  { %194 = vsyncpa [#allocation3], 1 }
  0x25   :  { %195 = vsyncpa [#allocation6], 1 }
  0x26   :  { %196 = vsyncpa [#allocation4], 1 }

</bundles_post_ra>
